<compile_context>
chip_gen: v5e
topology: v5e:2x2
jax: 0.10.0
libtpu: 0.0.40
codegen_flags: <defaults>
</compile_context>

<pallas_src>
import functools
import math

import jax
import jax.numpy as jnp
from jax.experimental import pallas as pl
from jax.experimental.pallas import tpu as pltpu

LN_EPS = 1e-5


def _layer_norm(x, gamma, beta):
    mu = jnp.mean(x, axis=-1, keepdims=True)
    var = jnp.mean((x - mu) ** 2, axis=-1, keepdims=True)
    inv = jax.lax.rsqrt(var + LN_EPS)
    return (x - mu) * inv * gamma + beta


# --------------------------------------------------------------------------------------
# Kernel: one post-norm encoder layer for one (batch, query-tile) grid point.
# --------------------------------------------------------------------------------------
def encoder_layer_kernel(src_ref, pos_ref,
                         wqk_ref, bqk_ref, wv_ref, bv_ref,
                         wo_ref, bo_ref, g1_ref, be1_ref,
                         w1_ref, b1_ref, w2_ref, b2_ref,
                         g2_ref, be2_ref,
                         out_ref,
                         qk_scr, v_scr,
                         *, nhead, tq):
    qi = pl.program_id(1)
    D = out_ref.shape[-1]
    Dh = D // nhead

    # --- Fused [Q | K] projection + V projection for the full sequence, once per batch
    # element (first query tile).  Cached in bf16 VMEM scratch, reused by later q-tiles.
    @pl.when(qi == 0)
    def _():
        x_full = src_ref[0]                                   # (S, D) f32
        p_full = pos_ref[0]                                   # (S, D) f32
        xp = (x_full + p_full).astype(jnp.bfloat16)           # q/k input (with pos)
        qk = jnp.dot(xp, wqk_ref[...],
                     preferred_element_type=jnp.float32) + bqk_ref[0]     # (S, 2D) f32
        v = jnp.dot(x_full.astype(jnp.bfloat16), wv_ref[...],
                    preferred_element_type=jnp.float32) + bv_ref[0]       # (S, D) f32
        qk_scr[...] = qk.astype(jnp.bfloat16)
        v_scr[...] = v.astype(jnp.bfloat16)

    row0 = pl.multiple_of(qi * tq, tq)
    x_q = src_ref[0, pl.ds(row0, tq), :]                      # (tq, D) f32 residual rows

    q_rows = qk_scr[pl.ds(row0, tq), :]                       # (tq, 2D) bf16 ([Q|K] cols)
    k_all = qk_scr[...]                                       # (S, 2D) bf16
    v_all = v_scr[...]                                        # (S, D)  bf16

    # --- Multi-head attention.  Scale is already folded into Wq/bq.  Head outputs are
    # accumulated through head-major Wo slices instead of concatenated.
    attn = jnp.zeros((tq, D), jnp.float32)
    for h in range(nhead):
        lo = h * Dh
        qh = q_rows[:, lo:lo + Dh]                            # (tq, Dh) bf16
        kh = k_all[:, D + lo:D + lo + Dh]                     # (S, Dh)  bf16
        vh = v_all[:, lo:lo + Dh]                             # (S, Dh)  bf16
        s = jax.lax.dot_general(qh, kh, (((1,), (1,)), ((), ())),
                                preferred_element_type=jnp.float32)       # (tq, S) f32
        s = s - jnp.max(s, axis=-1, keepdims=True)
        e = jnp.exp(s)
        p = e * pl.reciprocal(jnp.sum(e, axis=-1, keepdims=True), approx=True)
        oh = jnp.dot(p.astype(jnp.bfloat16), vh,
                     preferred_element_type=jnp.float32)                  # (tq, Dh)
        attn = attn + jnp.dot(oh.astype(jnp.bfloat16), wo_ref[h],
                              preferred_element_type=jnp.float32)         # (tq, D)
    attn = attn + bo_ref[0]

    # --- residual + LayerNorm 1 (f32)
    x1 = _layer_norm(x_q + attn, g1_ref[0], be1_ref[0])

    # --- FFN: linear1 -> relu -> linear2 (bf16 matmuls, f32 accumulate)
    h1 = jnp.dot(x1.astype(jnp.bfloat16), w1_ref[...],
                 preferred_element_type=jnp.float32) + b1_ref[0]
    h1 = jnp.maximum(h1, 0.0)
    h2 = jnp.dot(h1.astype(jnp.bfloat16), w2_ref[...],
                 preferred_element_type=jnp.float32) + b2_ref[0]

    # --- residual + LayerNorm 2 (f32)
    out_ref[0] = _layer_norm(x1 + h2, g2_ref[0], be2_ref[0])


def _pick_q_tile(S):
    if S % 128 == 0:
        return 128
    for t in (64, 32, 16, 8):
        if t < S and S % t == 0:
            return t
    return S


def encoder_layer(src, pos, params, *, nhead):
    B, S, D = src.shape
    F_ = params["w1"].shape[1]
    Dh = D // nhead
    tq = _pick_q_tile(S)

    def full_spec(shape):
        return pl.BlockSpec(shape, lambda b, q: tuple(0 for _ in shape))

    in_specs = [
        pl.BlockSpec((1, S, D), lambda b, q: (b, 0, 0)),   # src (full sequence per batch)
        pl.BlockSpec((1, S, D), lambda b, q: (b, 0, 0)),   # pos
        full_spec((D, 2 * D)), full_spec((1, 2 * D)),      # packed [Wq*scale | Wk], bias
        full_spec((D, D)), full_spec((1, D)),              # Wv, bv
        full_spec((nhead, Dh, D)), full_spec((1, D)),      # Wo (head-major), bo
        full_spec((1, D)), full_spec((1, D)),              # ln1 gamma, beta
        full_spec((D, F_)), full_spec((1, F_)),            # W1, b1
        full_spec((F_, D)), full_spec((1, D)),             # W2, b2
        full_spec((1, D)), full_spec((1, D)),              # ln2 gamma, beta
    ]

    kernel = functools.partial(encoder_layer_kernel, nhead=nhead, tq=tq)
    return pl.pallas_call(
        kernel,
        out_shape=jax.ShapeDtypeStruct((B, S, D), jnp.float32),
        grid_spec=pltpu.PrefetchScalarGridSpec(
            num_scalar_prefetch=0,
            grid=(B, S // tq),
            in_specs=in_specs,
            out_specs=pl.BlockSpec((1, tq, D), lambda b, q: (b, q, 0)),
            scratch_shapes=[
                pltpu.VMEM((S, 2 * D), jnp.bfloat16),   # cached [Q | K] projections
                pltpu.VMEM((S, D), jnp.bfloat16),       # cached V projection
            ],
        ),
        compiler_params=pltpu.CompilerParams(
            dimension_semantics=("parallel", "arbitrary"),
            vmem_limit_bytes=64 * 1024 * 1024,
        ),
    )(src, pos,
      params["wqk"], params["bqk"], params["wv"], params["bv"],
      params["wo3"], params["bo"], params["g1"], params["be1"],
      params["w1"], params["b1"], params["w2"], params["b2"],
      params["g2"], params["be2"])


def transformer_encoder(src, pos, packed_layer_params, *, nhead, final_norm=None):
    # Mirrors TransformerEncoder.forward: sequential layers, optional final norm.
    out = src
    for p in packed_layer_params:
        out = encoder_layer(out, pos, p, nhead=nhead)
    if final_norm is not None:   # DETR post-norm encoder uses norm=None
        g, b = final_norm
        out = _layer_norm(out, g, b)
    return out


# --------------------------------------------------------------------------------------
# Parameter construction (logical f32, x @ W convention) and host-side packing.
# --------------------------------------------------------------------------------------
def make_layer_params(key, d_model, dim_ff):
    ks = jax.random.split(key, 8)
    s = 0.05
    return {
        "wq": s * jax.random.normal(ks[0], (d_model, d_model), jnp.float32),
        "bq": jnp.zeros((1, d_model), jnp.float32),
        "wk": s * jax.random.normal(ks[1], (d_model, d_model), jnp.float32),
        "bk": jnp.zeros((1, d_model), jnp.float32),
        "wv": s * jax.random.normal(ks[2], (d_model, d_model), jnp.float32),
        "bv": jnp.zeros((1, d_model), jnp.float32),
        "wo": s * jax.random.normal(ks[3], (d_model, d_model), jnp.float32),
        "bo": jnp.zeros((1, d_model), jnp.float32),
        "g1": jnp.ones((1, d_model), jnp.float32),
        "be1": jnp.zeros((1, d_model), jnp.float32),
        "w1": s * jax.random.normal(ks[4], (d_model, dim_ff), jnp.float32),
        "b1": 0.01 * jax.random.normal(ks[5], (1, dim_ff), jnp.float32),
        "w2": s * jax.random.normal(ks[6], (dim_ff, d_model), jnp.float32),
        "b2": 0.01 * jax.random.normal(ks[7], (1, d_model), jnp.float32),
        "g2": jnp.ones((1, d_model), jnp.float32),
        "be2": jnp.zeros((1, d_model), jnp.float32),
    }


def pack_layer_params(p, nhead):
    """Fold attention scale into Wq/bq, fuse [Q|K] weights, head-major Wo, bf16 weights."""
    D = p["wq"].shape[0]
    Dh = D // nhead
    scale = 1.0 / math.sqrt(Dh)
    return {
        "wqk": jnp.concatenate([p["wq"] * scale, p["wk"]], axis=1).astype(jnp.bfloat16),
        "bqk": jnp.concatenate([p["bq"] * scale, p["bk"]], axis=1),          # (1, 2D) f32
        "wv": p["wv"].astype(jnp.bfloat16), "bv": p["bv"],
        "wo3": p["wo"].reshape(nhead, Dh, D).astype(jnp.bfloat16), "bo": p["bo"],
        "g1": p["g1"], "be1": p["be1"],
        "w1": p["w1"].astype(jnp.bfloat16), "b1": p["b1"],
        "w2": p["w2"].astype(jnp.bfloat16), "b2": p["b2"],
        "g2": p["g2"], "be2": p["be2"],
    }


# --------------------------------------------------------------------------------------
# Pure-JAX f32 reference (mirrors DETR TransformerEncoderLayer.forward_post).
# --------------------------------------------------------------------------------------
def _reference_layer(x, pos, p, *, nhead):
    B, S, D = x.shape
    Dh = D // nhead
    qk_in = x + pos
    q = qk_in @ p["wq"] + p["bq"]
    k = qk_in @ p["wk"] + p["bk"]
    v = x @ p["wv"] + p["bv"]

    def split(t):
        return t.reshape(B, S, nhead, Dh).transpose(0, 2, 1, 3)

    qh, kh, vh = split(q), split(k), split(v)
    s = jnp.einsum("bhqd,bhkd->bhqk", qh, kh) / math.sqrt(Dh)
    a = jax.nn.softmax(s, axis=-1)
    o = jnp.einsum("bhqk,bhkd->bhqd", a, vh).transpose(0, 2, 1, 3).reshape(B, S, D)
    attn = o @ p["wo"] + p["bo"]
    x1 = _layer_norm(x + attn, p["g1"], p["be1"])
    h = jnp.maximum(x1 @ p["w1"] + p["b1"], 0.0)
    h2 = h @ p["w2"] + p["b2"]
    return _layer_norm(x1 + h2, p["g2"], p["be2"])


def reference_encoder(src, pos, layer_params, *, nhead):
    out = src
    for p in layer_params:
        out = _reference_layer(out, pos, p, nhead=nhead)
    return out


if __name__ == "__main__":
    B, S, D, H, F_, L = 2, 16, 32, 4, 64, 2

    key = jax.random.PRNGKey(0)
    k_src, k_pos, k_par = jax.random.split(key, 3)
    src = jax.random.normal(k_src, (B, S, D), jnp.float32)
    pos = jax.random.normal(k_pos, (B, S, D), jnp.float32)

    layer_keys = jax.random.split(k_par, L)
    layer_params = [make_layer_params(layer_keys[i], D, F_) for i in range(L)]
    packed_params = [pack_layer_params(p, H) for p in layer_params]

    out = transformer_encoder(src, pos, packed_params, nhead=H)
    jax.block_until_ready(out)

    assert out.shape == (B, S, D)
    assert bool(jnp.all(jnp.isfinite(out)))

    ref = reference_encoder(src, pos, layer_params, nhead=H)
    err = float(jnp.max(jnp.abs(out - ref)))
    assert err < 0.3, f"max abs err vs reference too large: {err}"

    print("KERNEL_OK")
</pallas_src>

<mosaic_0001>
module attributes {stable_mosaic.version = 11 : i64} {
  func.func @encoder_layer_kernel(%arg0: i32, %arg1: i32, %arg2: memref<1x16x32xf32, #tpu.memory_space<vmem>>, %arg3: memref<1x16x32xf32, #tpu.memory_space<vmem>>, %arg4: memref<32x64xbf16, #tpu.memory_space<vmem>>, %arg5: memref<1x64xf32, #tpu.memory_space<vmem>>, %arg6: memref<32x32xbf16, #tpu.memory_space<vmem>>, %arg7: memref<1x32xf32, #tpu.memory_space<vmem>>, %arg8: memref<4x8x32xbf16, #tpu.memory_space<vmem>>, %arg9: memref<1x32xf32, #tpu.memory_space<vmem>>, %arg10: memref<1x32xf32, #tpu.memory_space<vmem>>, %arg11: memref<1x32xf32, #tpu.memory_space<vmem>>, %arg12: memref<32x64xbf16, #tpu.memory_space<vmem>>, %arg13: memref<1x64xf32, #tpu.memory_space<vmem>>, %arg14: memref<64x32xbf16, #tpu.memory_space<vmem>>, %arg15: memref<1x32xf32, #tpu.memory_space<vmem>>, %arg16: memref<1x32xf32, #tpu.memory_space<vmem>>, %arg17: memref<1x32xf32, #tpu.memory_space<vmem>>, %arg18: memref<1x8x32xf32, #tpu.memory_space<vmem>>, %arg19: memref<16x64xbf16, #tpu.memory_space<vmem>>, %arg20: memref<16x32xbf16, #tpu.memory_space<vmem>>) attributes {dimension_semantics = [#tpu.dimension_semantics<parallel>, #tpu.dimension_semantics<arbitrary>], iteration_bounds = array<i64: 2, 2>, scalar_prefetch = 0 : i64, scratch_operands = 2 : i64, tpu.core_type = #tpu.core_type<tc>, window_params = [{transform_indices = @transform_0, window_bounds = array<i64: 1, 16, 32>}, {transform_indices = @transform_1, window_bounds = array<i64: 1, 16, 32>}, {pipeline_mode = #tpu.pipeline_mode<synchronous>, transform_indices = @transform_2, window_bounds = array<i64: 32, 64>}, {pipeline_mode = #tpu.pipeline_mode<synchronous>, transform_indices = @transform_3, window_bounds = array<i64: 1, 64>}, {pipeline_mode = #tpu.pipeline_mode<synchronous>, transform_indices = @transform_4, window_bounds = array<i64: 32, 32>}, {pipeline_mode = #tpu.pipeline_mode<synchronous>, transform_indices = @transform_5, window_bounds = array<i64: 1, 32>}, {pipeline_mode = #tpu.pipeline_mode<synchronous>, transform_indices = @transform_6, window_bounds = array<i64: 4, 8, 32>}, {pipeline_mode = #tpu.pipeline_mode<synchronous>, transform_indices = @transform_7, window_bounds = array<i64: 1, 32>}, {pipeline_mode = #tpu.pipeline_mode<synchronous>, transform_indices = @transform_8, window_bounds = array<i64: 1, 32>}, {pipeline_mode = #tpu.pipeline_mode<synchronous>, transform_indices = @transform_9, window_bounds = array<i64: 1, 32>}, {pipeline_mode = #tpu.pipeline_mode<synchronous>, transform_indices = @transform_10, window_bounds = array<i64: 32, 64>}, {pipeline_mode = #tpu.pipeline_mode<synchronous>, transform_indices = @transform_11, window_bounds = array<i64: 1, 64>}, {pipeline_mode = #tpu.pipeline_mode<synchronous>, transform_indices = @transform_12, window_bounds = array<i64: 64, 32>}, {pipeline_mode = #tpu.pipeline_mode<synchronous>, transform_indices = @transform_13, window_bounds = array<i64: 1, 32>}, {pipeline_mode = #tpu.pipeline_mode<synchronous>, transform_indices = @transform_14, window_bounds = array<i64: 1, 32>}, {pipeline_mode = #tpu.pipeline_mode<synchronous>, transform_indices = @transform_15, window_bounds = array<i64: 1, 32>}, {transform_indices = @transform_16, window_bounds = array<i64: 1, 8, 32>}]} {
    %c0_i32 = arith.constant 0 : i32
    %0 = arith.cmpi eq, %arg1, %c0_i32 : i32
    %1 = arith.extui %0 : i1 to i32
    %c0_i32_0 = arith.constant 0 : i32
    %2 = arith.cmpi ne, %1, %c0_i32_0 : i32
    scf.if %2 {
      %c0_70 = arith.constant 0 : index
      %c0_71 = arith.constant 0 : index
      %c0_72 = arith.constant 0 : index
      %181 = vector.load %arg2[%c0_70, %c0_71, %c0_72] : memref<1x16x32xf32, #tpu.memory_space<vmem>>, vector<1x16x32xf32>
      %182 = vector.shape_cast %181 : vector<1x16x32xf32> to vector<16x32xf32>
      %c0_73 = arith.constant 0 : index
      %c0_74 = arith.constant 0 : index
      %c0_75 = arith.constant 0 : index
      %183 = vector.load %arg3[%c0_73, %c0_74, %c0_75] : memref<1x16x32xf32, #tpu.memory_space<vmem>>, vector<1x16x32xf32>
      %184 = vector.shape_cast %183 : vector<1x16x32xf32> to vector<16x32xf32>
      %185 = arith.addf %182, %184 : vector<16x32xf32>
      %186 = arith.truncf %185 : vector<16x32xf32> to vector<16x32xbf16>
      %c0_76 = arith.constant 0 : index
      %c0_77 = arith.constant 0 : index
      %187 = vector.load %arg4[%c0_76, %c0_77] : memref<32x64xbf16, #tpu.memory_space<vmem>>, vector<32x64xbf16>
      %cst_78 = arith.constant dense<0.000000e+00> : vector<16x64xf32>
      %188 = tpu.matmul %186, %187, %cst_78 {dimension_numbers = #tpu.dot_dimension_numbers<[1], [0], [0], [1], [0, 0, 1, 1], [], []>} : vector<16x32xbf16>, vector<32x64xbf16>, vector<16x64xf32> -> vector<16x64xf32>
      %c0_79 = arith.constant 0 : index
      %c0_80 = arith.constant 0 : index
      %189 = vector.load %arg5[%c0_79, %c0_80] : memref<1x64xf32, #tpu.memory_space<vmem>>, vector<1x64xf32>
      %190 = vector.shape_cast %189 : vector<1x64xf32> to vector<64xf32>
      %191 = vector.shape_cast %190 : vector<64xf32> to vector<1x64xf32>
      %192 = vector.broadcast %191 : vector<1x64xf32> to vector<16x64xf32>
      %193 = arith.addf %188, %192 : vector<16x64xf32>
      %194 = arith.truncf %182 : vector<16x32xf32> to vector<16x32xbf16>
      %c0_81 = arith.constant 0 : index
      %c0_82 = arith.constant 0 : index
      %195 = vector.load %arg6[%c0_81, %c0_82] : memref<32x32xbf16, #tpu.memory_space<vmem>>, vector<32x32xbf16>
      %cst_83 = arith.constant dense<0.000000e+00> : vector<16x32xf32>
      %196 = tpu.matmul %194, %195, %cst_83 {dimension_numbers = #tpu.dot_dimension_numbers<[1], [0], [0], [1], [0, 0, 1, 1], [], []>} : vector<16x32xbf16>, vector<32x32xbf16>, vector<16x32xf32> -> vector<16x32xf32>
      %c0_84 = arith.constant 0 : index
      %c0_85 = arith.constant 0 : index
      %197 = vector.load %arg7[%c0_84, %c0_85] : memref<1x32xf32, #tpu.memory_space<vmem>>, vector<1x32xf32>
      %198 = vector.shape_cast %197 : vector<1x32xf32> to vector<32xf32>
      %199 = vector.shape_cast %198 : vector<32xf32> to vector<1x32xf32>
      %200 = vector.broadcast %199 : vector<1x32xf32> to vector<16x32xf32>
      %201 = arith.addf %196, %200 : vector<16x32xf32>
      %202 = arith.truncf %193 : vector<16x64xf32> to vector<16x64xbf16>
      %c0_86 = arith.constant 0 : index
      %c0_87 = arith.constant 0 : index
      %203 = vector.load %arg19[%c0_86, %c0_87] : memref<16x64xbf16, #tpu.memory_space<vmem>>, vector<16x64xbf16>
      tpu.vector_store %arg19[%c0_86, %c0_87], %202 {strides = array<i32>} : memref<16x64xbf16, #tpu.memory_space<vmem>>, vector<16x64xbf16>,
      %204 = arith.truncf %201 : vector<16x32xf32> to vector<16x32xbf16>
      %c0_88 = arith.constant 0 : index
      %c0_89 = arith.constant 0 : index
      %205 = vector.load %arg20[%c0_88, %c0_89] : memref<16x32xbf16, #tpu.memory_space<vmem>>, vector<16x32xbf16>
      tpu.vector_store %arg20[%c0_88, %c0_89], %204 {strides = array<i32>} : memref<16x32xbf16, #tpu.memory_space<vmem>>, vector<16x32xbf16>,
    } else {
    }
    %c8_i32 = arith.constant 8 : i32
    %3 = arith.muli %arg1, %c8_i32 : i32
    %4 = tpu.assume_multiple %3, 8 : i32
    %c0 = arith.constant 0 : index
    %5 = arith.index_cast %4 : i32 to index
    %c0_1 = arith.constant 0 : index
    %6 = vector.load %arg2[%c0, %5, %c0_1] : memref<1x16x32xf32, #tpu.memory_space<vmem>>, vector<1x8x32xf32>
    %7 = vector.shape_cast %6 : vector<1x8x32xf32> to vector<8x32xf32>
    %8 = arith.index_cast %4 : i32 to index
    %c0_2 = arith.constant 0 : index
    %9 = vector.load %arg19[%8, %c0_2] : memref<16x64xbf16, #tpu.memory_space<vmem>>, vector<8x64xbf16>
    %c0_3 = arith.constant 0 : index
    %c0_4 = arith.constant 0 : index
    %10 = vector.load %arg19[%c0_3, %c0_4] : memref<16x64xbf16, #tpu.memory_space<vmem>>, vector<16x64xbf16>
    %c0_5 = arith.constant 0 : index
    %c0_6 = arith.constant 0 : index
    %11 = vector.load %arg20[%c0_5, %c0_6] : memref<16x32xbf16, #tpu.memory_space<vmem>>, vector<16x32xbf16>
    %cst = arith.constant 0.000000e+00 : f32
    %12 = vector.broadcast %cst : f32 to vector<8x32xf32>
    %13 = vector.extract_strided_slice %9 {offsets = [0, 0], sizes = [8, 8], strides = [1, 1]} : vector<8x64xbf16> to vector<8x8xbf16>
    %14 = vector.extract_strided_slice %10 {offsets = [0, 32], sizes = [16, 8], strides = [1, 1]} : vector<16x64xbf16> to vector<16x8xbf16>
    %15 = vector.extract_strided_slice %11 {offsets = [0, 0], sizes = [16, 8], strides = [1, 1]} : vector<16x32xbf16> to vector<16x8xbf16>
    %cst_7 = arith.constant dense<0.000000e+00> : vector<8x16xf32>
    %16 = tpu.matmul %13, %14, %cst_7 {dimension_numbers = #tpu.dot_dimension_numbers<[1], [1], [0], [0], [0, 0, 1, 0], [], []>} : vector<8x8xbf16>, vector<16x8xbf16>, vector<8x16xf32> -> vector<8x16xf32>
    %cst_8 = arith.constant dense<0xFF800000> : vector<8xf32>
    %17 = vector.multi_reduction <maximumf>, %16, %cst_8 [1] : vector<8x16xf32> to vector<8xf32>
    %18 = vector.shape_cast %17 : vector<8xf32> to vector<8x1xf32>
    %19 = vector.broadcast %18 : vector<8x1xf32> to vector<8x16xf32>
    %20 = arith.subf %16, %19 : vector<8x16xf32>
    %21 = math.exp %20 : vector<8x16xf32>
    %cst_9 = arith.constant dense<0.000000e+00> : vector<8xf32>
    %22 = vector.multi_reduction <add>, %21, %cst_9 [1] : vector<8x16xf32> to vector<8xf32>
    %23 = vector.shape_cast %22 : vector<8xf32> to vector<8x1xf32>
    %24 = tpu.reciprocal %23 {approx = true} : vector<8x1xf32> -> vector<8x1xf32>
    %25 = vector.broadcast %24 : vector<8x1xf32> to vector<8x16xf32>
    %26 = arith.mulf %21, %25 : vector<8x16xf32>
    %27 = arith.truncf %26 : vector<8x16xf32> to vector<8x16xbf16>
    %cst_10 = arith.constant dense<0.000000e+00> : vector<8x8xf32>
    %28 = tpu.matmul %27, %15, %cst_10 {dimension_numbers = #tpu.dot_dimension_numbers<[1], [0], [0], [1], [0, 0, 1, 1], [], []>} : vector<8x16xbf16>, vector<16x8xbf16>, vector<8x8xf32> -> vector<8x8xf32>
    %29 = arith.truncf %28 : vector<8x8xf32> to vector<8x8xbf16>
    %c0_11 = arith.constant 0 : index
    %c0_12 = arith.constant 0 : index
    %c0_13 = arith.constant 0 : index
    %30 = vector.load %arg8[%c0_11, %c0_12, %c0_13] : memref<4x8x32xbf16, #tpu.memory_space<vmem>>, vector<1x8x32xbf16>
    %31 = vector.shape_cast %30 : vector<1x8x32xbf16> to vector<8x32xbf16>
    %cst_14 = arith.constant dense<0.000000e+00> : vector<8x32xf32>
    %32 = tpu.matmul %29, %31, %cst_14 {dimension_numbers = #tpu.dot_dimension_numbers<[1], [0], [0], [1], [0, 0, 1, 1], [], []>} : vector<8x8xbf16>, vector<8x32xbf16>, vector<8x32xf32> -> vector<8x32xf32>
    %33 = arith.addf %12, %32 : vector<8x32xf32>
    %34 = vector.extract_strided_slice %9 {offsets = [0, 8], sizes = [8, 8], strides = [1, 1]} : vector<8x64xbf16> to vector<8x8xbf16>
    %35 = vector.extract_strided_slice %10 {offsets = [0, 40], sizes = [16, 8], strides = [1, 1]} : vector<16x64xbf16> to vector<16x8xbf16>
    %36 = vector.extract_strided_slice %11 {offsets = [0, 8], sizes = [16, 8], strides = [1, 1]} : vector<16x32xbf16> to vector<16x8xbf16>
    %cst_15 = arith.constant dense<0.000000e+00> : vector<8x16xf32>
    %37 = tpu.matmul %34, %35, %cst_15 {dimension_numbers = #tpu.dot_dimension_numbers<[1], [1], [0], [0], [0, 0, 1, 0], [], []>} : vector<8x8xbf16>, vector<16x8xbf16>, vector<8x16xf32> -> vector<8x16xf32>
    %cst_16 = arith.constant dense<0xFF800000> : vector<8xf32>
    %38 = vector.multi_reduction <maximumf>, %37, %cst_16 [1] : vector<8x16xf32> to vector<8xf32>
    %39 = vector.shape_cast %38 : vector<8xf32> to vector<8x1xf32>
    %40 = vector.broadcast %39 : vector<8x1xf32> to vector<8x16xf32>
    %41 = arith.subf %37, %40 : vector<8x16xf32>
    %42 = math.exp %41 : vector<8x16xf32>
    %cst_17 = arith.constant dense<0.000000e+00> : vector<8xf32>
    %43 = vector.multi_reduction <add>, %42, %cst_17 [1] : vector<8x16xf32> to vector<8xf32>
    %44 = vector.shape_cast %43 : vector<8xf32> to vector<8x1xf32>
    %45 = tpu.reciprocal %44 {approx = true} : vector<8x1xf32> -> vector<8x1xf32>
    %46 = vector.broadcast %45 : vector<8x1xf32> to vector<8x16xf32>
    %47 = arith.mulf %42, %46 : vector<8x16xf32>
    %48 = arith.truncf %47 : vector<8x16xf32> to vector<8x16xbf16>
    %cst_18 = arith.constant dense<0.000000e+00> : vector<8x8xf32>
    %49 = tpu.matmul %48, %36, %cst_18 {dimension_numbers = #tpu.dot_dimension_numbers<[1], [0], [0], [1], [0, 0, 1, 1], [], []>} : vector<8x16xbf16>, vector<16x8xbf16>, vector<8x8xf32> -> vector<8x8xf32>
    %50 = arith.truncf %49 : vector<8x8xf32> to vector<8x8xbf16>
    %c1 = arith.constant 1 : index
    %c0_19 = arith.constant 0 : index
    %c0_20 = arith.constant 0 : index
    %51 = vector.load %arg8[%c1, %c0_19, %c0_20] : memref<4x8x32xbf16, #tpu.memory_space<vmem>>, vector<1x8x32xbf16>
    %52 = vector.shape_cast %51 : vector<1x8x32xbf16> to vector<8x32xbf16>
    %cst_21 = arith.constant dense<0.000000e+00> : vector<8x32xf32>
    %53 = tpu.matmul %50, %52, %cst_21 {dimension_numbers = #tpu.dot_dimension_numbers<[1], [0], [0], [1], [0, 0, 1, 1], [], []>} : vector<8x8xbf16>, vector<8x32xbf16>, vector<8x32xf32> -> vector<8x32xf32>
    %54 = arith.addf %33, %53 : vector<8x32xf32>
    %55 = vector.extract_strided_slice %9 {offsets = [0, 16], sizes = [8, 8], strides = [1, 1]} : vector<8x64xbf16> to vector<8x8xbf16>
    %56 = vector.extract_strided_slice %10 {offsets = [0, 48], sizes = [16, 8], strides = [1, 1]} : vector<16x64xbf16> to vector<16x8xbf16>
    %57 = vector.extract_strided_slice %11 {offsets = [0, 16], sizes = [16, 8], strides = [1, 1]} : vector<16x32xbf16> to vector<16x8xbf16>
    %cst_22 = arith.constant dense<0.000000e+00> : vector<8x16xf32>
    %58 = tpu.matmul %55, %56, %cst_22 {dimension_numbers = #tpu.dot_dimension_numbers<[1], [1], [0], [0], [0, 0, 1, 0], [], []>} : vector<8x8xbf16>, vector<16x8xbf16>, vector<8x16xf32> -> vector<8x16xf32>
    %cst_23 = arith.constant dense<0xFF800000> : vector<8xf32>
    %59 = vector.multi_reduction <maximumf>, %58, %cst_23 [1] : vector<8x16xf32> to vector<8xf32>
    %60 = vector.shape_cast %59 : vector<8xf32> to vector<8x1xf32>
    %61 = vector.broadcast %60 : vector<8x1xf32> to vector<8x16xf32>
    %62 = arith.subf %58, %61 : vector<8x16xf32>
    %63 = math.exp %62 : vector<8x16xf32>
    %cst_24 = arith.constant dense<0.000000e+00> : vector<8xf32>
    %64 = vector.multi_reduction <add>, %63, %cst_24 [1] : vector<8x16xf32> to vector<8xf32>
    %65 = vector.shape_cast %64 : vector<8xf32> to vector<8x1xf32>
    %66 = tpu.reciprocal %65 {approx = true} : vector<8x1xf32> -> vector<8x1xf32>
    %67 = vector.broadcast %66 : vector<8x1xf32> to vector<8x16xf32>
    %68 = arith.mulf %63, %67 : vector<8x16xf32>
    %69 = arith.truncf %68 : vector<8x16xf32> to vector<8x16xbf16>
    %cst_25 = arith.constant dense<0.000000e+00> : vector<8x8xf32>
    %70 = tpu.matmul %69, %57, %cst_25 {dimension_numbers = #tpu.dot_dimension_numbers<[1], [0], [0], [1], [0, 0, 1, 1], [], []>} : vector<8x16xbf16>, vector<16x8xbf16>, vector<8x8xf32> -> vector<8x8xf32>
    %71 = arith.truncf %70 : vector<8x8xf32> to vector<8x8xbf16>
    %c2 = arith.constant 2 : index
    %c0_26 = arith.constant 0 : index
    %c0_27 = arith.constant 0 : index
    %72 = vector.load %arg8[%c2, %c0_26, %c0_27] : memref<4x8x32xbf16, #tpu.memory_space<vmem>>, vector<1x8x32xbf16>
    %73 = vector.shape_cast %72 : vector<1x8x32xbf16> to vector<8x32xbf16>
    %cst_28 = arith.constant dense<0.000000e+00> : vector<8x32xf32>
    %74 = tpu.matmul %71, %73, %cst_28 {dimension_numbers = #tpu.dot_dimension_numbers<[1], [0], [0], [1], [0, 0, 1, 1], [], []>} : vector<8x8xbf16>, vector<8x32xbf16>, vector<8x32xf32> -> vector<8x32xf32>
    %75 = arith.addf %54, %74 : vector<8x32xf32>
    %76 = vector.extract_strided_slice %9 {offsets = [0, 24], sizes = [8, 8], strides = [1, 1]} : vector<8x64xbf16> to vector<8x8xbf16>
    %77 = vector.extract_strided_slice %10 {offsets = [0, 56], sizes = [16, 8], strides = [1, 1]} : vector<16x64xbf16> to vector<16x8xbf16>
    %78 = vector.extract_strided_slice %11 {offsets = [0, 24], sizes = [16, 8], strides = [1, 1]} : vector<16x32xbf16> to vector<16x8xbf16>
    %cst_29 = arith.constant dense<0.000000e+00> : vector<8x16xf32>
    %79 = tpu.matmul %76, %77, %cst_29 {dimension_numbers = #tpu.dot_dimension_numbers<[1], [1], [0], [0], [0, 0, 1, 0], [], []>} : vector<8x8xbf16>, vector<16x8xbf16>, vector<8x16xf32> -> vector<8x16xf32>
    %cst_30 = arith.constant dense<0xFF800000> : vector<8xf32>
    %80 = vector.multi_reduction <maximumf>, %79, %cst_30 [1] : vector<8x16xf32> to vector<8xf32>
    %81 = vector.shape_cast %80 : vector<8xf32> to vector<8x1xf32>
    %82 = vector.broadcast %81 : vector<8x1xf32> to vector<8x16xf32>
    %83 = arith.subf %79, %82 : vector<8x16xf32>
    %84 = math.exp %83 : vector<8x16xf32>
    %cst_31 = arith.constant dense<0.000000e+00> : vector<8xf32>
    %85 = vector.multi_reduction <add>, %84, %cst_31 [1] : vector<8x16xf32> to vector<8xf32>
    %86 = vector.shape_cast %85 : vector<8xf32> to vector<8x1xf32>
    %87 = tpu.reciprocal %86 {approx = true} : vector<8x1xf32> -> vector<8x1xf32>
    %88 = vector.broadcast %87 : vector<8x1xf32> to vector<8x16xf32>
    %89 = arith.mulf %84, %88 : vector<8x16xf32>
    %90 = arith.truncf %89 : vector<8x16xf32> to vector<8x16xbf16>
    %cst_32 = arith.constant dense<0.000000e+00> : vector<8x8xf32>
    %91 = tpu.matmul %90, %78, %cst_32 {dimension_numbers = #tpu.dot_dimension_numbers<[1], [0], [0], [1], [0, 0, 1, 1], [], []>} : vector<8x16xbf16>, vector<16x8xbf16>, vector<8x8xf32> -> vector<8x8xf32>
    %92 = arith.truncf %91 : vector<8x8xf32> to vector<8x8xbf16>
    %c3 = arith.constant 3 : index
    %c0_33 = arith.constant 0 : index
    %c0_34 = arith.constant 0 : index
    %93 = vector.load %arg8[%c3, %c0_33, %c0_34] : memref<4x8x32xbf16, #tpu.memory_space<vmem>>, vector<1x8x32xbf16>
    %94 = vector.shape_cast %93 : vector<1x8x32xbf16> to vector<8x32xbf16>
    %cst_35 = arith.constant dense<0.000000e+00> : vector<8x32xf32>
    %95 = tpu.matmul %92, %94, %cst_35 {dimension_numbers = #tpu.dot_dimension_numbers<[1], [0], [0], [1], [0, 0, 1, 1], [], []>} : vector<8x8xbf16>, vector<8x32xbf16>, vector<8x32xf32> -> vector<8x32xf32>
    %96 = arith.addf %75, %95 : vector<8x32xf32>
    %c0_36 = arith.constant 0 : index
    %c0_37 = arith.constant 0 : index
    %97 = vector.load %arg9[%c0_36, %c0_37] : memref<1x32xf32, #tpu.memory_space<vmem>>, vector<1x32xf32>
    %98 = vector.shape_cast %97 : vector<1x32xf32> to vector<32xf32>
    %99 = vector.shape_cast %98 : vector<32xf32> to vector<1x32xf32>
    %100 = vector.broadcast %99 : vector<1x32xf32> to vector<8x32xf32>
    %101 = arith.addf %96, %100 : vector<8x32xf32>
    %102 = arith.addf %7, %101 : vector<8x32xf32>
    %c0_38 = arith.constant 0 : index
    %c0_39 = arith.constant 0 : index
    %103 = vector.load %arg10[%c0_38, %c0_39] : memref<1x32xf32, #tpu.memory_space<vmem>>, vector<1x32xf32>
    %104 = vector.shape_cast %103 : vector<1x32xf32> to vector<32xf32>
    %c0_40 = arith.constant 0 : index
    %c0_41 = arith.constant 0 : index
    %105 = vector.load %arg11[%c0_40, %c0_41] : memref<1x32xf32, #tpu.memory_space<vmem>>, vector<1x32xf32>
    %106 = vector.shape_cast %105 : vector<1x32xf32> to vector<32xf32>
    %cst_42 = arith.constant dense<0.000000e+00> : vector<8xf32>
    %107 = vector.multi_reduction <add>, %102, %cst_42 [1] : vector<8x32xf32> to vector<8xf32>
    %108 = vector.shape_cast %107 : vector<8xf32> to vector<8x1xf32>
    %cst_43 = arith.constant 3.200000e+01 : f32
    %109 = vector.broadcast %cst_43 : f32 to vector<8x1xf32>
    %110 = arith.divf %108, %109 : vector<8x1xf32>
    %111 = vector.broadcast %110 : vector<8x1xf32> to vector<8x32xf32>
    %112 = arith.subf %102, %111 : vector<8x32xf32>
    %113 = arith.mulf %112, %112 : vector<8x32xf32>
    %cst_44 = arith.constant dense<0.000000e+00> : vector<8xf32>
    %114 = vector.multi_reduction <add>, %113, %cst_44 [1] : vector<8x32xf32> to vector<8xf32>
    %115 = vector.shape_cast %114 : vector<8xf32> to vector<8x1xf32>
    %cst_45 = arith.constant 3.200000e+01 : f32
    %116 = vector.broadcast %cst_45 : f32 to vector<8x1xf32>
    %117 = arith.divf %115, %116 : vector<8x1xf32>
    %cst_46 = arith.constant 9.99999974E-6 : f32
    %118 = vector.broadcast %cst_46 : f32 to vector<8x1xf32>
    %119 = arith.addf %117, %118 : vector<8x1xf32>
    %120 = math.rsqrt %119 : vector<8x1xf32>
    %121 = vector.broadcast %110 : vector<8x1xf32> to vector<8x32xf32>
    %122 = arith.subf %102, %121 : vector<8x32xf32>
    %123 = vector.broadcast %120 : vector<8x1xf32> to vector<8x32xf32>
    %124 = arith.mulf %122, %123 : vector<8x32xf32>
    %125 = vector.shape_cast %104 : vector<32xf32> to vector<1x32xf32>
    %126 = vector.broadcast %125 : vector<1x32xf32> to vector<8x32xf32>
    %127 = arith.mulf %124, %126 : vector<8x32xf32>
    %128 = vector.shape_cast %106 : vector<32xf32> to vector<1x32xf32>
    %129 = vector.broadcast %128 : vector<1x32xf32> to vector<8x32xf32>
    %130 = arith.addf %127, %129 : vector<8x32xf32>
    %131 = arith.truncf %130 : vector<8x32xf32> to vector<8x32xbf16>
    %c0_47 = arith.constant 0 : index
    %c0_48 = arith.constant 0 : index
    %132 = vector.load %arg12[%c0_47, %c0_48] : memref<32x64xbf16, #tpu.memory_space<vmem>>, vector<32x64xbf16>
    %cst_49 = arith.constant dense<0.000000e+00> : vector<8x64xf32>
    %133 = tpu.matmul %131, %132, %cst_49 {dimension_numbers = #tpu.dot_dimension_numbers<[1], [0], [0], [1], [0, 0, 1, 1], [], []>} : vector<8x32xbf16>, vector<32x64xbf16>, vector<8x64xf32> -> vector<8x64xf32>
    %c0_50 = arith.constant 0 : index
    %c0_51 = arith.constant 0 : index
    %134 = vector.load %arg13[%c0_50, %c0_51] : memref<1x64xf32, #tpu.memory_space<vmem>>, vector<1x64xf32>
    %135 = vector.shape_cast %134 : vector<1x64xf32> to vector<64xf32>
    %136 = vector.shape_cast %135 : vector<64xf32> to vector<1x64xf32>
    %137 = vector.broadcast %136 : vector<1x64xf32> to vector<8x64xf32>
    %138 = arith.addf %133, %137 : vector<8x64xf32>
    %cst_52 = arith.constant 0.000000e+00 : f32
    %139 = vector.broadcast %cst_52 : f32 to vector<8x64xf32>
    %140 = arith.maximumf %138, %139 : vector<8x64xf32>
    %141 = arith.truncf %140 : vector<8x64xf32> to vector<8x64xbf16>
    %c0_53 = arith.constant 0 : index
    %c0_54 = arith.constant 0 : index
    %142 = vector.load %arg14[%c0_53, %c0_54] : memref<64x32xbf16, #tpu.memory_space<vmem>>, vector<64x32xbf16>
    %cst_55 = arith.constant dense<0.000000e+00> : vector<8x32xf32>
    %143 = tpu.matmul %141, %142, %cst_55 {dimension_numbers = #tpu.dot_dimension_numbers<[1], [0], [0], [1], [0, 0, 1, 1], [], []>} : vector<8x64xbf16>, vector<64x32xbf16>, vector<8x32xf32> -> vector<8x32xf32>
    %c0_56 = arith.constant 0 : index
    %c0_57 = arith.constant 0 : index
    %144 = vector.load %arg15[%c0_56, %c0_57] : memref<1x32xf32, #tpu.memory_space<vmem>>, vector<1x32xf32>
    %145 = vector.shape_cast %144 : vector<1x32xf32> to vector<32xf32>
    %146 = vector.shape_cast %145 : vector<32xf32> to vector<1x32xf32>
    %147 = vector.broadcast %146 : vector<1x32xf32> to vector<8x32xf32>
    %148 = arith.addf %143, %147 : vector<8x32xf32>
    %149 = arith.addf %130, %148 : vector<8x32xf32>
    %c0_58 = arith.constant 0 : index
    %c0_59 = arith.constant 0 : index
    %150 = vector.load %arg16[%c0_58, %c0_59] : memref<1x32xf32, #tpu.memory_space<vmem>>, vector<1x32xf32>
    %151 = vector.shape_cast %150 : vector<1x32xf32> to vector<32xf32>
    %c0_60 = arith.constant 0 : index
    %c0_61 = arith.constant 0 : index
    %152 = vector.load %arg17[%c0_60, %c0_61] : memref<1x32xf32, #tpu.memory_space<vmem>>, vector<1x32xf32>
    %153 = vector.shape_cast %152 : vector<1x32xf32> to vector<32xf32>
    %cst_62 = arith.constant dense<0.000000e+00> : vector<8xf32>
    %154 = vector.multi_reduction <add>, %149, %cst_62 [1] : vector<8x32xf32> to vector<8xf32>
    %155 = vector.shape_cast %154 : vector<8xf32> to vector<8x1xf32>
    %cst_63 = arith.constant 3.200000e+01 : f32
    %156 = vector.broadcast %cst_63 : f32 to vector<8x1xf32>
    %157 = arith.divf %155, %156 : vector<8x1xf32>
    %158 = vector.broadcast %157 : vector<8x1xf32> to vector<8x32xf32>
    %159 = arith.subf %149, %158 : vector<8x32xf32>
    %160 = arith.mulf %159, %159 : vector<8x32xf32>
    %cst_64 = arith.constant dense<0.000000e+00> : vector<8xf32>
    %161 = vector.multi_reduction <add>, %160, %cst_64 [1] : vector<8x32xf32> to vector<8xf32>
    %162 = vector.shape_cast %161 : vector<8xf32> to vector<8x1xf32>
    %cst_65 = arith.constant 3.200000e+01 : f32
    %163 = vector.broadcast %cst_65 : f32 to vector<8x1xf32>
    %164 = arith.divf %162, %163 : vector<8x1xf32>
    %cst_66 = arith.constant 9.99999974E-6 : f32
    %165 = vector.broadcast %cst_66 : f32 to vector<8x1xf32>
    %166 = arith.addf %164, %165 : vector<8x1xf32>
    %167 = math.rsqrt %166 : vector<8x1xf32>
    %168 = vector.broadcast %157 : vector<8x1xf32> to vector<8x32xf32>
    %169 = arith.subf %149, %168 : vector<8x32xf32>
    %170 = vector.broadcast %167 : vector<8x1xf32> to vector<8x32xf32>
    %171 = arith.mulf %169, %170 : vector<8x32xf32>
    %172 = vector.shape_cast %151 : vector<32xf32> to vector<1x32xf32>
    %173 = vector.broadcast %172 : vector<1x32xf32> to vector<8x32xf32>
    %174 = arith.mulf %171, %173 : vector<8x32xf32>
    %175 = vector.shape_cast %153 : vector<32xf32> to vector<1x32xf32>
    %176 = vector.broadcast %175 : vector<1x32xf32> to vector<8x32xf32>
    %177 = arith.addf %174, %176 : vector<8x32xf32>
    %c0_67 = arith.constant 0 : index
    %c0_68 = arith.constant 0 : index
    %c0_69 = arith.constant 0 : index
    %178 = vector.load %arg18[%c0_67, %c0_68, %c0_69] : memref<1x8x32xf32, #tpu.memory_space<vmem>>, vector<1x8x32xf32>
    %179 = vector.shape_cast %178 : vector<1x8x32xf32> to vector<8x32xf32>
    %180 = vector.shape_cast %177 : vector<8x32xf32> to vector<1x8x32xf32>
    tpu.vector_store %arg18[%c0_67, %c0_68, %c0_69], %180 {strides = array<i32>} : memref<1x8x32xf32, #tpu.memory_space<vmem>>, vector<1x8x32xf32>,
    return
  }
  func.func @transform_0(%arg0: i32, %arg1: i32) -> (i32, i32, i32) {
    %c0_i32 = arith.constant 0 : i32
    %c0_i32_0 = arith.constant 0 : i32
    %c0_i32_1 = arith.constant 0 : i32
    return %arg0, %c0_i32, %c0_i32_0 : i32, i32, i32
  }
  func.func @transform_1(%arg0: i32, %arg1: i32) -> (i32, i32, i32) {
    %c0_i32 = arith.constant 0 : i32
    %c0_i32_0 = arith.constant 0 : i32
    %c0_i32_1 = arith.constant 0 : i32
    return %arg0, %c0_i32, %c0_i32_0 : i32, i32, i32
  }
  func.func @transform_2(%arg0: i32, %arg1: i32) -> (i32, i32) {
    %c0_i32 = arith.constant 0 : i32
    %c0_i32_0 = arith.constant 0 : i32
    %c0_i32_1 = arith.constant 0 : i32
    return %c0_i32, %c0_i32_0 : i32, i32
  }
  func.func @transform_3(%arg0: i32, %arg1: i32) -> (i32, i32) {
    %c0_i32 = arith.constant 0 : i32
    %c0_i32_0 = arith.constant 0 : i32
    %c0_i32_1 = arith.constant 0 : i32
    return %c0_i32, %c0_i32_0 : i32, i32
  }
  func.func @transform_4(%arg0: i32, %arg1: i32) -> (i32, i32) {
    %c0_i32 = arith.constant 0 : i32
    %c0_i32_0 = arith.constant 0 : i32
    %c0_i32_1 = arith.constant 0 : i32
    return %c0_i32, %c0_i32_0 : i32, i32
  }
  func.func @transform_5(%arg0: i32, %arg1: i32) -> (i32, i32) {
    %c0_i32 = arith.constant 0 : i32
    %c0_i32_0 = arith.constant 0 : i32
    %c0_i32_1 = arith.constant 0 : i32
    return %c0_i32, %c0_i32_0 : i32, i32
  }
  func.func @transform_6(%arg0: i32, %arg1: i32) -> (i32, i32, i32) {
    %c0_i32 = arith.constant 0 : i32
    %c0_i32_0 = arith.constant 0 : i32
    %c0_i32_1 = arith.constant 0 : i32
    %c0_i32_2 = arith.constant 0 : i32
    return %c0_i32, %c0_i32_0, %c0_i32_1 : i32, i32, i32
  }
  func.func @transform_7(%arg0: i32, %arg1: i32) -> (i32, i32) {
    %c0_i32 = arith.constant 0 : i32
    %c0_i32_0 = arith.constant 0 : i32
    %c0_i32_1 = arith.constant 0 : i32
    return %c0_i32, %c0_i32_0 : i32, i32
  }
  func.func @transform_8(%arg0: i32, %arg1: i32) -> (i32, i32) {
    %c0_i32 = arith.constant 0 : i32
    %c0_i32_0 = arith.constant 0 : i32
    %c0_i32_1 = arith.constant 0 : i32
    return %c0_i32, %c0_i32_0 : i32, i32
  }
  func.func @transform_9(%arg0: i32, %arg1: i32) -> (i32, i32) {
    %c0_i32 = arith.constant 0 : i32
    %c0_i32_0 = arith.constant 0 : i32
    %c0_i32_1 = arith.constant 0 : i32
    return %c0_i32, %c0_i32_0 : i32, i32
  }
  func.func @transform_10(%arg0: i32, %arg1: i32) -> (i32, i32) {
    %c0_i32 = arith.constant 0 : i32
    %c0_i32_0 = arith.constant 0 : i32
    %c0_i32_1 = arith.constant 0 : i32
    return %c0_i32, %c0_i32_0 : i32, i32
  }
  func.func @transform_11(%arg0: i32, %arg1: i32) -> (i32, i32) {
    %c0_i32 = arith.constant 0 : i32
    %c0_i32_0 = arith.constant 0 : i32
    %c0_i32_1 = arith.constant 0 : i32
    return %c0_i32, %c0_i32_0 : i32, i32
  }
  func.func @transform_12(%arg0: i32, %arg1: i32) -> (i32, i32) {
    %c0_i32 = arith.constant 0 : i32
    %c0_i32_0 = arith.constant 0 : i32
    %c0_i32_1 = arith.constant 0 : i32
    return %c0_i32, %c0_i32_0 : i32, i32
  }
  func.func @transform_13(%arg0: i32, %arg1: i32) -> (i32, i32) {
    %c0_i32 = arith.constant 0 : i32
    %c0_i32_0 = arith.constant 0 : i32
    %c0_i32_1 = arith.constant 0 : i32
    return %c0_i32, %c0_i32_0 : i32, i32
  }
  func.func @transform_14(%arg0: i32, %arg1: i32) -> (i32, i32) {
    %c0_i32 = arith.constant 0 : i32
    %c0_i32_0 = arith.constant 0 : i32
    %c0_i32_1 = arith.constant 0 : i32
    return %c0_i32, %c0_i32_0 : i32, i32
  }
  func.func @transform_15(%arg0: i32, %arg1: i32) -> (i32, i32) {
    %c0_i32 = arith.constant 0 : i32
    %c0_i32_0 = arith.constant 0 : i32
    %c0_i32_1 = arith.constant 0 : i32
    return %c0_i32, %c0_i32_0 : i32, i32
  }
  func.func @transform_16(%arg0: i32, %arg1: i32) -> (i32, i32, i32) {
    %c0_i32 = arith.constant 0 : i32
    %c0_i32_0 = arith.constant 0 : i32
    return %arg0, %arg1, %c0_i32 : i32, i32, i32
  }
}

</mosaic_0001>

<bundles_post_ra>
// kernel: tpu_custom_call.1
= control target key start
LH: loop header
LB: loop body
LE: loop exit
PB: predicated region body
PF: predicated region fallthrough
CT: control target
= control target key end

     0   :  { %s2330_s0 = inlined_call_operand.vmem [shape: f32[2,16,32], index: 0, kind: input, shape index: {}]   ;;  %s2331_s1 = inlined_call_operand.hbm [shape: f32[2,16,32], index: 1, kind: input, shape index: {}]   ;;  %s2332_s2 = inlined_call_operand.vmem [shape: bf16[32,64], index: 2, kind: input, shape index: {}]   ;;  %s2333_s3 = inlined_call_operand.vmem [shape: f32[1,64], index: 3, kind: input, shape index: {}]   ;;  %s2334_s4 = inlined_call_operand.hbm [shape: bf16[32,32], index: 4, kind: input, shape index: {}]   ;;  %s2335_s5 = inlined_call_operand.vmem [shape: f32[1,32], index: 5, kind: input, shape index: {}]   ;;  %s2336_s6 = inlined_call_operand.hbm [shape: bf16[4,8,32], index: 6, kind: input, shape index: {}]   ;;  %s2337_s7 = inlined_call_operand.vmem [shape: f32[1,32], index: 7, kind: input, shape index: {}]   ;;  %s2338_s8 = inlined_call_operand.vmem [shape: f32[1,32], index: 8, kind: input, shape index: {}]   ;;  %s2339_s9 = inlined_call_operand.vmem [shape: f32[1,32], index: 9, kind: input, shape index: {}]   ;;  %s2340_s10 = inlined_call_operand.hbm [shape: bf16[32,64], index: 10, kind: input, shape index: {}]   ;;  %s2341_s11 = inlined_call_operand.vmem [shape: f32[1,64], index: 11, kind: input, shape index: {}]   ;;  %s2342_s12 = inlined_call_operand.vmem [shape: bf16[64,32], index: 12, kind: input, shape index: {}]   ;;  %s2343_s13 = inlined_call_operand.vmem [shape: f32[1,32], index: 13, kind: input, shape index: {}]   ;;  %s2344_s14 = inlined_call_operand.vmem [shape: f32[1,32], index: 14, kind: input, shape index: {}]   ;;  %s2345_s15 = inlined_call_operand.vmem [shape: f32[1,32], index: 15, kind: input, shape index: {}]   ;;  %s2346_s16 = inlined_call_operand.hbm [shape: f32[2,16,32], index: 16, kind: output, shape index: {}]  }
   0x1   :  { %2356 = sst [smem:[#allocation23_spill]] %s2330_s0 }
   0x2   :  { %2357 = sst [smem:[#allocation24_spill]] %s2333_s3 }
   0x3   :  { %2358 = sst [smem:[#allocation25_spill]] %s2334_s4 }
   0x4   :  { %2359 = sst [smem:[#allocation26_spill]] %s2335_s5 }
   0x5   :  { %2360 = sst [smem:[#allocation27_spill]] %s2336_s6 }
   0x6   :  { %2361 = sst [smem:[#allocation28_spill]] %s2337_s7 }
   0x7   :  { %2362 = sst [smem:[#allocation29_spill]] %s2338_s8 }
   0x8   :  { %2363 = sst [smem:[#allocation30_spill]] %s2339_s9 }
   0x9   :  { %2364 = sst [smem:[#allocation31_spill]] %s2340_s10 }
   0xa   :  { %2365 = sst [smem:[#allocation32_spill]] %s2341_s11 }
   0xb   :  { %2366 = sst [smem:[#allocation33_spill]] %s2342_s12 }
   0xc   :  { %2367 = sst [smem:[#allocation34_spill]] %s2343_s13 }
   0xd   :  { %2368 = sst [smem:[#allocation35_spill]] %s2344_s14 }
   0xe   :  { %2369 = sst [smem:[#allocation36_spill]] %s2345_s15 }
   0xf   :  { %2370 = sst [smem:[#allocation37_spill]] %s2346_s16 }
  0x10   :  { %21 = vsyncpa [#allocation5], 0 }
  0x11   :  { %23 = vsyncpa [#allocation5 + $0x1], 0 }
  0x12   :  { %24 = vsyncpa [#allocation8], 0 }
  0x13   :  { %25 = vsyncpa [#allocation11], 0 }
  0x14   :  { %26 = vsyncpa [#allocation6], 0 }
  0x15   :  { %28 = vsyncpa [#allocation6 + $0x1], 0  ;;  %s2003_s21 = smov 0   ;;  %s2005_s22 = smov 0  }
  0x16   :  { %s2007_s23 = smov 0   ;;  %s2009_s24 = smov 0  }
  0x17   :  { %s2011_s25 = smov 0   ;;  %s2013_s26 = smov 0  }
  0x18   :  { %s2015_s27 = smov 0   ;;  %s2017_s28 = smov 0  }
  0x19   :  { %s2019_s29 = smov 0   ;;  %s2021_s30 = smov 0  }
  0x1a   :  { %s2023_s0 = smov 0  }
  0x1b LB: > { %2371 = sst [smem:[#allocation17_spill]] %s1861_s21  ;;  %s1371_s17 = sadd.s32 4294967295, %s1901_s0   ;;  %s1901_s0 = sphi %s2023_s0, %s34_s0   ;;  %s1897_s30 = sphi %s2021_s30, %s2413_s30   ;;  %s1893_s29 = sphi %s2019_s29, %s2404_s29   ;;  %s1889_s28 = sphi %s2017_s28, %s2412_s28   ;;  %s1885_s27 = sphi %s2015_s27, %s2403_s27   ;;  %s1881_s26 = sphi %s2013_s26, %s2411_s26   ;;  %s1877_s25 = sphi %s2011_s25, %s2410_s25   ;;  %s1873_s24 = sphi %s2009_s24, %s2409_s24   ;;  %s1869_s23 = sphi %s2007_s23, %s2408_s23   ;;  %s1865_s22 = sphi %s2005_s22, %s2407_s22   ;;  %s1861_s21 = sphi %s2003_s21, %s2406_s21  }
  0x1c   : > { %2372 = sst [smem:[#allocation18_spill]] %s1893_s29  ;;  %s1372_s18 = sadd.s32 4294967294, %s1901_s0  }
  0x1d   : > { %p92_p0 = scmp.ne.s32.totalorder %s1877_s25, %s1873_s24  ;;  %p2059_p1 = scmp.eq.s32.totalorder %s1371_s17, 0 }
  0x1e   : > { %p411_p2 = scmp.ne.s32.totalorder %s1869_s23, %s1865_s22  ;;  %p412_p3 = scmp.eq.s32.totalorder %s1371_s17, 3 }
  0x1f   : > { %p2067_p4 = por %p2059_p1, %p92_p0  ;;  %p417_p5 = scmp.ne.s32.totalorder %s1865_s22, %s1861_s21 }
  0x20   : > { %p2073_p6 = por %p412_p3, %p411_p2  ;;  %p418_p7 = scmp.eq.s32.totalorder %s1372_s18, 3 }
  0x21   : > { %p1373_p8 = scmp.ge.s32.totalorder %s1901_s0, 1  ;;  %p425_p9 = scmp.lt.s32.totalorder %s1901_s0, 5 }
  0x22   : > { %s2375_s15 = scalar_select %p2073_p6, 1, 0 }
  0x23   : > { %p2079_p10 = por %p418_p7, %p417_p5  ;;  %p2083_p11 = pnand %p1373_p8, %p425_p9 }
  0x24   : > { %2376 = sst [smem:[#allocation19_spill]] %s2375_s15  ;;  %s1903_s15 = smov [#allocation7]  }
  0x25   : > { %s2377_s24 = scalar_select %p2079_p10, 1, 0 }
  0x26   : > { %s2380_s4 = sld [smem:[#allocation25_spill]]  ;;  %p1491_p12 = pneg %p2083_p11 }
  0x27   : > { %2378 = sst [smem:[#allocation20_spill]] %s2377_s24  ;;  %s444_s18 = sshll.u32 %s1903_s15, 4  ;;  %s445_s18 = int_to_ptr.vmem [resolvable:$true] %s444_s18 }
  0x28   : > { %p2094_p13 = pnand %p1491_p12, %p2059_p1  ;;  %s2382_s6 = sld [smem:[#allocation27_spill]] }
  0x29   : > { %s1904_s17 = smov 64   ;;  %s2383_s10 = sld [smem:[#allocation31_spill]] }
  0x2a   : > { %s1906_s11 = smov [#allocation9]   ;;  %s46_s9 = sadd.s32 1, %s1897_s30 }
  0x2b   : > { %s461_s24 = sshll.u32 %s1906_s11, 4  ;;  %p86_p2 = scmp.ne.s32.totalorder %s1881_s26, %s1877_s25  ;;  %s462_s24 = int_to_ptr.vmem [resolvable:$true] %s461_s24 }
  0x2c   : > { %s442_s21 = sshll.u32 %s2380_s4, 4  ;;  %s1905_s4 = smov 4   ;;  %s443_s21 = int_to_ptr.hbm [resolvable:$true] %s442_s21 }
  0x2d   : > { %1494 = dma.hbm_to_vmem [thread:$0]  (!%p2094_p13), %s443_s21, 256, %s445_s18, [#allocation8], %s1904_s17, %s1904_s17, %s1905_s4  }
  0x2e   : > { %s459_s14 = sshll.u32 %s2382_s6, 4  ;;  %s1907_s6 = smov [#allocation10]   ;;  %s460_s14 = int_to_ptr.hbm [resolvable:$true] %s459_s14 }
  0x2f   : > { %s482_s8 = sshll.u32 %s2383_s10, 4  ;;  %s484_s12 = sshll.u32 %s1907_s6, 4  ;;  %s483_s8 = int_to_ptr.hbm [resolvable:$true] %s482_s8  ;;  %s485_s12 = int_to_ptr.vmem [resolvable:$true] %s484_s12 }
  0x30   : > { %1497 = dma.hbm_to_vmem [thread:$0]  (!%p2094_p13), %s460_s14, 256, %s462_s24, [#allocation8], %s1904_s17, %s1904_s17, %s1905_s4  }
  0x31   : > { %1500 = dma.hbm_to_vmem [thread:$0]  (!%p2094_p13), %s483_s8, 256, %s485_s12, [#allocation11], %s1904_s17, %s1904_s17, %s1905_s4  }
  0x32   : > { %s43_s21 = sadd.s32 1, %s1893_s29  ;;  %s79_s18 = sadd.s32 1, %s1881_s26 }
  0x33   : > { %p44_p0 = scmp.ge.s32.totalorder %s43_s21, 2  ;;  %p87_p3 = scmp.eq.s32.totalorder %s1901_s0, 0 }
  0x34   : > { %s401_s4 = sadd.s32 1, %s1869_s23  ;;  %p1512_p8 = scmp.lt.s32.totalorder %s1901_s0, 4 }
  0x35   : > { %s2415_s21 = smov (%p44_p0, %s43_s21), 0  ;;  %s2417_s9 = smov (!%p44_p0, %s46_s9), %s1897_s30 }
  0x36   : > { %2384 = sst [smem:[#allocation21_spill]] %s2415_s21  ;;  %p2119_p5 = por %p87_p3, %p86_p2 }
  0x37   : > { %s397_s13 = ssub.s32 %s1893_s29, %s2415_s21  ;;  %p48_p7 = scmp.ge.s32.totalorder %s2417_s9, 2 }
  0x38   : > { %s521_s8 = sand.u32 1, %s1881_s26   ;;  %s1461_s15 = sshll.u32 %s1897_s30, 4 }
  0x39   : > { %s2419_s9 = smov (%p48_p7, %s2417_s9), 0  ;;  %s1378_s12 = sshll.u32 %s521_s8, 4 }
  0x3a   : > { %2386 = sst [smem:[#allocation22_spill]] %s2419_s9  ;;  %s76_s14 = ssub.s32 %s1897_s30, %s2419_s9 }
  0x3b   : > { %p77_p9 = scmp.eq.s32.totalorder %s76_s14, 0  ;;  %s398_s17 = sor.u32 %s397_s13, %s76_s14 }
  0x3c   : > { %p399_p12 = scmp.eq.s32.totalorder %s398_s17, 0  ;;  %s530_s29 = scalar_lea.hbm %s2331_s1, %s1461_s15 }
  0x3d   : > { %s2134_s11 = scalar_select %p77_p9, %s1881_s26, %s79_s18  }
  0x3e   : > { %s2137_s24 = scalar_select %p399_p12, %s1869_s23, %s401_s4  }
  0x3f   : > { %s525_s7 = scalar_lea.vmem [#allocation4], %s1378_s12  ;;  %s531_s3 = sshll.u32 %s530_s29, 4  ;;  %s532_s3 = int_to_ptr.hbm [resolvable:$true] %s531_s3 }
  0x40   : > { %s533_s5 = sshll.u32 %s525_s7, 4  ;;  %p1502_p13 = pnand %p1512_p8, %p2119_p5  ;;  %s534_s5 = int_to_ptr.vmem [resolvable:$true] %s533_s5 }
  0x41   : > { %s522_s9 = scalar_lea.sflag [#allocation5], %s521_s8  ;;  %s1908_s13 = smov 128  }
  0x42   : > { %s1909_s14 = smov 8   ;;  %545 = sbr.rel (%p2083_p11) target bundleno = 2387 (0x953), region = 84 }
  0x43   : > { %1504 = dma.hbm_to_vmem [thread:$0]  (!%p1502_p13), %s532_s3, 256, %s534_s5, %s522_s9, %s1908_s13, %s1908_s13, %s1909_s14  }
  0x44   : > { %s547_s18 = sand.u32 (!%p2083_p11), 1, %s1877_s25  }
  0x45   : > { %s1382_s10 = sshll.u32 (!%p2083_p11), %s547_s18, 4  ;;  %s548_s21 = scalar_lea.sflag (!%p2083_p11), [#allocation5], %s547_s18 }
  0x46   : > { %s551_s4 = scalar_lea.vmem (!%p2083_p11), [#allocation4], %s1382_s10 }
  0x47   : > { %1844 = dma.done.wait (%p2067_p4), %s548_s21, 256  }
  0x48   : > { %1846 = vsyncadd (%p2067_p4), %s548_s21, 4294967040 }
  0x49   : > { %1848 = dma.done.wait (%p2059_p1), [#allocation8], 512  }
  0x4a   : > { %1850 = vsyncadd (%p2059_p1), [#allocation8], 4294966784 }
  0x4b   : > { %1852 = dma.done.wait (%p2059_p1), [#allocation11], 256  }
  0x4c   : > { %1854 = vsyncadd (%p2059_p1), [#allocation11], 4294967040  ;;  %s618_s3 = sand.u32 1, %s1865_s22   ;;  %p621_p11 = scmp.lt.s32.totalorder %s1889_s28, 1 }
  0x4d   : > { %s2165_s5 = sshll.u32 %s618_s3, 3  ;;  %s2387_s9 = sld [smem:[#allocation23_spill]] }
  0x4e   : > { %s622_s7 = scalar_select %p621_p11, %s1889_s28, 1 }
  0x4f   : > { %s620_s8 = scalar_lea.vmem [#allocation12], %s2165_s5  ;;  %p1389_p1 = scmp.ne.s32.totalorder %s1885_s27, 0 }
  0x50   : > { %s1462_s16 = sshll.u32 %s622_s7, 4  ;;  %s2388_s18 = sld [smem:[#allocation24_spill]] (!%p1389_p1) }
  0x51   : > { %630 = sbr.rel (%p1389_p1) target bundleno = 234 (0xea), region = 104  ;;  %s2389_s7 = sld [smem:[#allocation26_spill]] (!%p1389_p1) }
  0x53   : > { %s2171_s6 = scalar_lea.vmem %s2387_s9, %s1462_s16 }
  0x56   : > { %v1464_v0 = vld [vmem:[%s2332_s2 + $0x8] sm:$0xff]  ;;  %v1466_v1 = vld [vmem:[#allocation7 + $0x8] sm:$0xff]  ;;  %v1463_v2 = vld [vmem:[%s2332_s2] sm:$0xff]  ;;  %vm658_vm0 = vcmask 261120   ;;  %vm716_vm1 = vcmask 519168   ;;  %vm721_vm2 = vcmask 257024  }
  0x57   : > { %v1465_v3 = vld [vmem:[#allocation7] sm:$0xff]  ;;  %v631_v4 = vld [vmem:[%s2171_s6] sm:$0xff]  ;;  %v632_v5 = vld [vmem:[%s2171_s6 + $0x8] sm:$0xff]  ;;  %668 = vmatpush.bf16.msra.mxu0 %v1464_v0  ;;  %706 = vmatpush.bf16.msra.mxu1 %v1466_v1 }
  0x58   : > { %v633_v6 = vld [vmem:[%s551_s4] sm:$0xff]  ;;  %v634_v7 = vld [vmem:[%s551_s4 + $0x8] sm:$0xff]  ;;  %v676_v11 = vpack.c.bf16 %v632_v5, %v631_v4 }
  0x59   : > { %v635_v8 = vadd.f32 %v633_v6, %v631_v4  ;;  %v636_v9 = vadd.f32 %v634_v7, %v632_v5  ;;  %v1620_v12 = vld [vmem:[%s2388_s18] ss:$0 sm:$0xff] }
  0x5a   : > { %v1621_v13 = vld [vmem:[%s2389_s7] ss:$0 sm:$0xff] }
  0x5b   : > { %v637_v10 = vpack.c.bf16 %v636_v9, %v635_v8  ;;  %669 = vmatpush.bf16.msra.mxu0 %v1463_v2  ;;  %707 = vmatpush.bf16.msra.mxu1 %v1465_v3 }
  0x5e   : > { %1398 = vmatmul.msk.bf16.vlgmr.msra.gmra.mxu0 %vm658_vm0, %v637_v10  ;;  %1407 = vmatmul.msk.bf16.vlgmr.msra.gmra.mxu1 %vm658_vm0, %v676_v11 }
  0xdb   : > { %v671_v14 = vpop.f32.mrf.mxu0  ;;  %v709_v15 = vpop.f32.mrf.mxu1 }
  0xdc   : > { %v672_v16 = vadd.f32 %v1620_v12, %v671_v14  ;;  %v710_v17 = vadd.f32 %v1621_v13, %v709_v15 }
  0xde   : > { %v714_v18 = vpack.c.bf16 %v672_v16, %v672_v16  ;;  %v719_v19 = vpack.c.bf16 %v710_v17, %v710_v17 }
  0xe0   : > { %717 = vst.msk [vmem:[#allocation2] sm:$0xf] %vm716_vm1, %v714_v18 }
  0xe1   : > { %722 = vst.msk [vmem:[#allocation3] sm:$0xf] %vm721_vm2, %v719_v19 }
  0xe3   : > { %v673_v20 = vpop.f32.mrf.mxu0  ;;  %v711_v21 = vpop.f32.mrf.mxu1 }
  0xe4   : > { %v674_v22 = vadd.f32 %v1620_v12, %v673_v20  ;;  %v712_v23 = vadd.f32 %v1621_v13, %v711_v21 }
  0xe6   : > { %v715_v24 = vpack.c.bf16 %v674_v22, %v674_v22  ;;  %v720_v25 = vpack.c.bf16 %v712_v23, %v712_v23 }
  0xe8   : > { %718 = vst.msk [vmem:[#allocation2 + $0x4] sm:$0xf] %vm716_vm1, %v715_v24 }
  0xe9   : > { %723 = vst.msk [vmem:[#allocation3 + $0x4] sm:$0xf] %vm721_vm2, %v720_v25 }
  0xea PF: > { %s1910_s4 = smov 96   ;;  %s1911_s16 = smov 88   ;;  %vm743_vm3 = vcmask 64512   ;;  %vm763_vm4 = vcmask 130048   ;;  %v799_v61 = vld [vmem:[#allocation9] sm:$0xf] }
  0xeb   : > { %s1408_s29 = sshll.u32 %s1885_s27, 3  ;;  %s1912_s12 = smov 120   ;;  %vm863_vm5 = vcmask 1043456   ;;  %v859_v11 = vld [vmem:[#allocation9 + $0x4] sm:$0xf]  ;;  %vm1061_vm6 = vcmask 261120  }
  0xec   : > { %s727_s20 = sshra.s32 %s1408_s29, 3  ;;  %s1913_s17 = smov 104   ;;  %v884_v62 = vsel %vm863_vm5, %v799_v61, 0  ;;  %v865_v12 = vsel %vm863_vm5, %v859_v11, 0  ;;  %vm1174_vm11 = vcmask 523264  }
  0xed   : > { %s1409_s9 = sshll.u32 %s727_s20, 2  ;;  %s1914_s15 = smov 112  }
  0xee   : > { %s730_s19 = scalar_lea.vmem [#allocation2], %s1409_s9  ;;  %s1915_s13 = smov 72  }
  0xef   : > { %v1467_v26 = vld [vmem:[#allocation2] sm:$0xff]  ;;  %s1916_s14 = smov 80   ;;  %s2390_s21 = sld [smem:[#allocation28_spill]] }
  0xf0   : > { %741 = vrot.lane.b32.xlu0 %v1467_v26, %s1910_s4  ;;  %v731_v27 = vld [vmem:[%s730_s19] sm:$0xf]  ;;  %v2198_v40 = vld [vmem:[#allocation3] sm:$0xff]  ;;  %s725_s7 = scalar_lea.vmem %s2171_s6, %s1408_s29  ;;  %s2394_s4 = sld [smem:[#allocation32_spill]] }
  0xf1   : > { %v801_v28 = vunpack.c.l.b16 %v731_v27  ;;  %792 = vmatpush.bf16.msra.mxu1 %v2198_v40  ;;  %s2395_s9 = sld [smem:[#allocation34_spill]]  ;;  %s1457_s19 = sshll.u32 %s1889_s28, 1 }
  0xf2   : > { %s2400_s29 = sld [smem:[#allocation36_spill]]  ;;  %s1240_s20 = sshll.u32 %s620_s8, 4  ;;  %s1241_s20 = int_to_ptr.vmem [resolvable:$true] %s1240_s20 }
  0xf3   : > { %v802_v29 = vpack.c.b16 %v801_v28, %v801_v28 }
  0xf5   : > { %803 = vrot.lane.b32.xlu1 %v802_v29, %s1912_s12  ;;  %874 = vmatpush.bf16.msrb.mxu1 %v865_v12 }
  0xf8   : > { %805 = vrot.lane.b32.xlu0 %v1467_v26, %s1911_s16  ;;  %s2391_s16 = sld [smem:[#allocation33_spill]] }
 0x162   : > { %v742_v30 = vpop.permute.xlu0 %741 }
 0x163   : > { %v748_v31 = vsel %vm743_vm3, %v742_v30, 0 }
 0x164   : > { %757 = vmatpush.bf16.xpose.msra.mxu0 %v748_v31 }
 0x167   : > { %v804_v34 = vpop.permute.xlu1 %803 }
 0x16a   : > { %v806_v32 = vpop.permute.xlu0 %805 }
 0x16b   : > { %1414 = vmatmul.msk.bf16.vlgmr.msra.gmra.mxu0 %vm743_vm3, %v731_v27  ;;  %v811_v33 = vsel %vm743_vm3, %v806_v32, 0 }
 0x16c   : > { %820 = vmatpush.bf16.xpose.msra.mxu2 %v811_v33 }
 0x173   : > { %1420 = vmatmul.msk.bf16.vlgmr.msra.gmra.mxu2 %vm743_vm3, %v804_v34 }
 0x1e8   : > { %v759_v35 = vpop.f32.mrf.mxu0 }
 0x1e9   : > { %v764_v36 = vsel %vm763_vm4, %v759_v35, -inf }
 0x1ea   : > { %765 = vmax.xlane.f32.xlu1 %v764_v36 }
 0x1f0   : > { %v761_v37 = vpop.f32.mrf.mxu0 }
 0x1f6   : > { %v822_v38 = vpop.f32.mrf.mxu2 }
 0x1f7   : > { %v826_v46 = vsel %vm763_vm4, %v822_v38, -inf }
 0x1fe   : > { %v824_v39 = vpop.f32.mrf.mxu2 }
 0x203   : > { %976 = vrot.lane.b32.xlu1 %v802_v29, %s1913_s17 }
 0x20b   : > { %934 = vrot.lane.b32.xlu1 %v2198_v40, %s1914_s15 }
 0x25d   : > { %v766_v41 = vpop.xlane.xlu1 %765 }
 0x25e   : > { %v767_v42 = vsub.f32 %v759_v35, %v766_v41 }
 0x260   : > { %v768_v43 = vmul.f32 1.442695, %v767_v42 }
 0x262   : > { %1629 = vpow2.f32 %v768_v43 }
 0x268   : > { %v1630_v44 = vpop.eup %1629 }
 0x269   : > { %v770_v45 = vsel %vm763_vm4, %v1630_v44, 0.0 }
 0x26a   : > { %771 = vadd.xlane.f32.xlu2 %v770_v45 }
 0x272   : > { %827 = vmax.xlane.f32.xlu2 %v826_v46 }
 0x275   : > { %v977_v10 = vpop.permute.xlu1 %976 }
 0x28a   : > { %838 = vrot.lane.b32.xlu2 %v2198_v40, %s1912_s12  ;;  %s2392_s12 = sld [smem:[#allocation29_spill]] }
 0x292   : > { %978 = vrot.lane.b32.xlu2 %v1467_v26, %s1915_s13  ;;  %s2393_s13 = sld [smem:[#allocation30_spill]] }
 0x29a   : > { %901 = vrot.lane.b32.xlu2 %v1467_v26, %s1916_s14  ;;  %v935_v26 = vpop.permute.xlu1 %934  ;;  %s2396_s14 = sld [smem:[#allocation35_spill]] }
 0x29b   : > { %947 = vmatpush.bf16.msrb.mxu2 %v935_v26  ;;  %v1623_v26 = vld [vmem:[%s2392_s12] ss:$0 sm:$0xff]  ;;  %s1236_s12 = sadd.s32 %s1885_s27, %s1457_s19  ;;  %s1226_s19 = scalar_lea.sflag [#allocation6], %s618_s3 }
 0x2a2   : > { %899 = vrot.lane.b32.xlu2 %v802_v29, %s1914_s15 }
 0x2dd   : > { %v772_v47 = vpop.xlane.xlu2 %771 }
 0x2de   : > { %1631 = vrcp.f32 %v772_v47 }
 0x2e4   : > { %v1632_v48 = vpop.eup %1631 }
 0x2e5   : > { %v828_v49 = vpop.xlane.xlu2 %827  ;;  %v774_v50 = vmul.f32 %v1632_v48, %v1630_v44 }
 0x2e6   : > { %v829_v51 = vsub.f32 %v822_v38, %v828_v49  ;;  %v955_v38 = vld [vmem:[#allocation9 + $0x8] sm:$0xf] }
 0x2e7   : > { %v775_v52 = vpack.c.bf16 %v774_v50, %v774_v50  ;;  %v960_v39 = vsel %vm863_vm5, %v955_v38, 0 }
 0x2e8   : > { %v830_v53 = vmul.f32 1.442695, %v829_v51 }
 0x2e9   : > { %1419 = vmatmul.msk.bf16.vlgmr.msra.gmra.mxu1 %vm763_vm4, %v775_v52 }
 0x2ea   : > { %1633 = vpow2.f32 %v830_v53  ;;  %969 = vmatpush.bf16.msra.mxu1 %v960_v39 }
 0x2ed   : > { %v839_v54 = vpop.permute.xlu2 %838 }
 0x2ee   : > { %851 = vmatpush.bf16.msra.mxu3 %v839_v54 }
 0x2f0   : > { %v1634_v55 = vpop.eup %1633 }
 0x2f1   : > { %v832_v56 = vsel %vm763_vm4, %v1634_v55, 0.0 }
 0x2f2   : > { %833 = vadd.xlane.f32.xlu0 %v832_v56  ;;  %893 = vmatpush.bf16.msrb.mxu3 %v884_v62 }
 0x2f5   : > { %v979_v57 = vpop.permute.xlu2 %978 }
 0x2f6   : > { %v984_v4 = vsel %vm743_vm3, %v979_v57, 0  ;;  %v1622_v57 = vld [vmem:[%s2390_s21] ss:$0 sm:$0xff]  ;;  %s2397_s21 = sld [smem:[#allocation37_spill]] }
 0x2fd   : > { %v902_v58 = vpop.permute.xlu2 %901 }
 0x2fe   : > { %v907_v59 = vsel %vm743_vm3, %v902_v58, 0 }
 0x2ff   : > { %916 = vmatpush.bf16.xpose.msrb.mxu0 %v907_v59 }
 0x305   : > { %v900_v60 = vpop.permute.xlu2 %899 }
 0x306   : > { %1424 = vmatmul.msk.bf16.vlgmr.msrb.gmra.mxu0 %vm743_vm3, %v900_v60  ;;  %v726_v60 = vld [vmem:[%s725_s7] sm:$0xff]  ;;  %s2398_s7 = smov %s2397_s21 }
 0x365   : > { %v834_v63 = vpop.xlane.xlu0 %833 }
 0x366   : > { %1635 = vrcp.f32 %v834_v63  ;;  %v794_v0 = vpop.f32.mrf.mxu1 }
 0x367   : > { %v798_v6 = vpack.c.bf16 %v794_v0, %v794_v0 }
 0x36c   : > { %v1636_v1 = vpop.eup %1635 }
 0x36d   : > { %v836_v2 = vmul.f32 %v1636_v1, %v1634_v55  ;;  %v1917_v1 = vmov 32.0  }
 0x36e   : > { %v796_v3 = vpop.f32.mrf.mxu1 }
 0x36f   : > { %v837_v5 = vpack.c.bf16 %v836_v2, %v836_v2 }
 0x371   : > { %1421 = vmatmul.msk.bf16.vlgmr.msra.gmra.mxu3 %vm763_vm4, %v837_v5 }
 0x372   : > { %993 = vmatpush.bf16.xpose.msra.mxu3 %v984_v4 }
 0x381   : > { %1423 = vmatmul.msk.bf16.vlgmr.msrb.gmra.mxu3 %vm743_vm3, %v798_v6 }
 0x383   : > { %v918_v7 = vpop.f32.mrf.mxu0 }
 0x384   : > { %v922_v8 = vsel %vm763_vm4, %v918_v7, -inf }
 0x385   : > { %923 = vmax.xlane.f32.xlu0 %v922_v8 }
 0x38b   : > { %v920_v9 = vpop.f32.mrf.mxu0 }
 0x391   : > { %1427 = vmatmul.msk.bf16.vlgmr.msra.gmra.mxu3 %vm743_vm3, %v977_v10 }
 0x3f4   : > { %v853_v13 = vpop.f32.mrf.mxu3 }
 0x3f5   : > { %v857_v14 = vpack.c.bf16 %v853_v13, %v853_v13  ;;  %v1470_v13 = vld [vmem:[#allocation10 + $0x8] sm:$0xff] }
 0x3f7   : > { %1422 = vmatmul.msk.bf16.vlgmr.msrb.gmra.mxu1 %vm743_vm3, %v857_v14  ;;  %v1469_v14 = vld [vmem:[#allocation10] sm:$0xff] }
 0x3f8   : > { %v924_v15 = vpop.xlane.xlu0 %923  ;;  %1129 = vmatpush.bf16.msrb.mxu1 %v1470_v13 }
 0x3f9   : > { %v925_v16 = vsub.f32 %v918_v7, %v924_v15  ;;  %v1474_v15 = vld [vmem:[%s2391_s16 + $0x18] sm:$0xff] }
 0x3fa   : > { %1182 = vmatpush.bf16.msrb.mxu3 %v1474_v15 }
 0x3fb   : > { %v926_v17 = vmul.f32 1.442695, %v925_v16 }
 0x3fc   : > { %v855_v18 = vpop.f32.mrf.mxu3  ;;  %1130 = vmatpush.bf16.msrb.mxu1 %v1469_v14 }
 0x3fd   : > { %1637 = vpow2.f32 %v926_v17  ;;  %v1473_v18 = vld [vmem:[%s2391_s16 + $0x10] sm:$0xff] }
 0x3fe   : > { %1183 = vmatpush.bf16.msrb.mxu3 %v1473_v18 }
 0x403   : > { %v1638_v19 = vpop.eup %1637 }
 0x404   : > { %v895_v20 = vpop.f32.mrf.mxu3  ;;  %v928_v21 = vsel %vm763_vm4, %v1638_v19, 0.0 }
 0x405   : > { %929 = vadd.xlane.f32.xlu0 %v928_v21 }
 0x40c   : > { %v897_v22 = vpop.f32.mrf.mxu3 }
 0x414   : > { %v995_v23 = vpop.f32.mrf.mxu3 }
 0x415   : > { %v999_v24 = vsel %vm763_vm4, %v995_v23, -inf }
 0x416   : > { %1000 = vmax.xlane.f32.xlu2 %v999_v24 }
 0x41c   : > { %v997_v25 = vpop.f32.mrf.mxu3 }
 0x474   : > { %v876_v27 = vpop.f32.mrf.mxu1 }
 0x475   : > { %v896_v50 = vadd.f32 %v895_v20, %v876_v27 }
 0x478   : > { %v930_v28 = vpop.xlane.xlu0 %929 }
 0x479   : > { %1639 = vrcp.f32 %v930_v28  ;;  %v1624_v28 = vld [vmem:[%s2393_s13] ss:$0 sm:$0xff] }
 0x47c   : > { %v878_v29 = vpop.f32.mrf.mxu1 }
 0x47f   : > { %v1640_v30 = vpop.eup %1639 }
 0x480   : > { %v932_v31 = vmul.f32 %v1640_v30, %v1638_v19 }
 0x482   : > { %v933_v32 = vpack.c.bf16 %v932_v31, %v932_v31 }
 0x484   : > { %1425 = vmatmul.msk.bf16.vlgmr.msrb.gmra.mxu2 %vm763_vm4, %v933_v32 }
 0x489   : > { %v1001_v33 = vpop.xlane.xlu2 %1000 }
 0x48a   : > { %v1002_v34 = vsub.f32 %v995_v23, %v1001_v33  ;;  %v1472_v33 = vld [vmem:[%s2391_s16 + $0x8] sm:$0xff] }
 0x48b   : > { %1184 = vmatpush.bf16.msrb.mxu3 %v1472_v33 }
 0x48c   : > { %v1003_v35 = vmul.f32 1.442695, %v1002_v34  ;;  %v1471_v34 = vld [vmem:[%s2391_s16] sm:$0xff] }
 0x48e   : > { %1641 = vpow2.f32 %v1003_v35  ;;  %v1625_v35 = vld [vmem:[%s2394_s4] ss:$0 sm:$0xff] }
 0x48f   : > { %1185 = vmatpush.bf16.msrb.mxu3 %v1471_v34 }
 0x494   : > { %v1642_v36 = vpop.eup %1641 }
 0x495   : > { %v1005_v37 = vsel %vm763_vm4, %v1642_v36, 0.0 }
 0x496   : > { %1006 = vadd.xlane.f32.xlu0 %v1005_v37 }
 0x4aa   : > { %1011 = vrot.lane.b32.xlu0 %v2198_v40, %s1913_s17  ;;  %v1032_v40 = vld [vmem:[#allocation9 + $0xc] sm:$0xf]  ;;  %s1458_s17 = sshll.u32 %s1236_s12, 3 }
 0x4ab   : > { %v1037_v49 = vsel %vm863_vm5, %v1032_v40, 0  ;;  %s1238_s6 = scalar_lea.hbm %s2397_s21, %s1458_s17 }
 0x4ac   : > { %1046 = vmatpush.bf16.msra.mxu2 %v1037_v49 }
 0x507   : > { %v949_v41 = vpop.f32.mrf.mxu2 }
 0x508   : > { %v953_v42 = vpack.c.bf16 %v949_v41, %v949_v41 }
 0x509   : > { %v1007_v43 = vpop.xlane.xlu0 %1006 }
 0x50a   : > { %1426 = vmatmul.msk.bf16.vlgmr.msra.gmra.mxu1 %vm743_vm3, %v953_v42  ;;  %1643 = vrcp.f32 %v1007_v43  ;;  %v1626_v42 = vld [vmem:[%s2395_s9] ss:$0 sm:$0xff]  ;;  %s1242_s9 = sshll.u32 %s1238_s6, 4  ;;  %s1243_s9 = int_to_ptr.hbm [resolvable:$true] %s1242_s9 }
 0x50b   : > { %1645 = vrcp.f32 %v1917_v1  ;;  %s1785_s12 = sshra.s32 %s1243_s9, 4  ;;  %s1786_s12 = int_to_ptr.hbm [resolvable:$true] %s1785_s12 }
 0x50c   : > { %s1787_s17 = scalar_lea.hbm %s1786_s12, 8  ;;  %p1792_p3 = scmp.lt.s32.totalorder %s1786_s12, %s2398_s7 }
 0x50d   : > { %p1788_p4 = scmp.ne.s32.totalorder %s1786_s12, %s1787_s17 }
 0x50f   : > { %v951_v44 = vpop.f32.mrf.mxu2  ;;  %p1789_p0 = pnand %p1788_p4, %p2073_p6 }
 0x510   : > { %v1644_v45 = vpop.eup %1643 }
 0x511   : > { %v1009_v46 = vmul.f32 %v1644_v45, %v1642_v36  ;;  %v1646_v2 = vpop.eup %1645  ;;  %p1790_p2 = pneg %p1789_p0 }
 0x512   : > { %v1066_v3 = vmul.f32 32.0, %v1646_v2  ;;  %vm1070_vm7 = vweird.f32 %v1646_v2 }
 0x513   : > { %v1010_v48 = vpack.c.bf16 %v1009_v46, %v1009_v46 }
 0x514   : > { %v1067_v4 = vsub.f32 1.0, %v1066_v3 }
 0x516   : > { %v1068_v5 = vmul.f32 %v1646_v2, %v1067_v4 }
 0x518   : > { %v1069_v6 = vadd.f32 %v1646_v2, %v1068_v5 }
 0x51a   : > { %v1071_v7 = vsel %vm1070_vm7, %v1646_v2, %v1069_v6 }
 0x51c   : > { %v1012_v47 = vpop.permute.xlu0 %1011 }
 0x51d   : > { %1024 = vmatpush.bf16.msra.mxu0 %v1012_v47 }
 0x520   : > { %1428 = vmatmul.msk.bf16.vlgmr.msra.gmra.mxu0 %vm763_vm4, %v1010_v48 }
 0x587   : > { %v971_v51 = vpop.f32.mrf.mxu1 }
 0x588   : > { %v975_v52 = vadd.f32 %v971_v51, %v896_v50 }
 0x58f   : > { %v973_v53 = vpop.f32.mrf.mxu1 }
 0x59d   : > { %v1026_v54 = vpop.f32.mrf.mxu0 }
 0x59e   : > { %v1030_v55 = vpack.c.bf16 %v1026_v54, %v1026_v54 }
 0x5a0   : > { %1429 = vmatmul.msk.bf16.vlgmr.msra.gmra.mxu2 %vm743_vm3, %v1030_v55 }
 0x5a5   : > { %v1028_v56 = vpop.f32.mrf.mxu0 }
 0x623   : > { %v1048_v58 = vpop.f32.mrf.mxu2 }
 0x624   : > { %v1052_v59 = vadd.f32 %v1048_v58, %v975_v52 }
 0x626   : > { %v1057_v61 = vadd.f32 %v1622_v57, %v1052_v59 }
 0x628   : > { %v1058_v62 = vadd.f32 %v1057_v61, %v726_v60  ;;  %v1627_v61 = vld [vmem:[%s2396_s14] ss:$0 sm:$0xff]  ;;  %s1791_s14 = scalar_lea.hbm %s2398_s7, 32 }
 0x629   : > { %p1793_p5 = scmp.lt.s32.totalorder %s1791_s14, %s1787_s17 }
 0x62a   : > { %v1062_v63 = vsel %vm1061_vm6, %v1058_v62, 0.0 }
 0x62b   : > { %v1050_v0 = vpop.f32.mrf.mxu2  ;;  %1063 = vadd.xlane.f32.xlu1 %v1062_v63  ;;  %p1794_p7 = por %p1793_p5, %p1792_p3 }
 0x62c   : > { %v1628_v0 = vld [vmem:[%s2400_s29] ss:$0 sm:$0xff] }
 0x62d   : > { %p1795_p8 = pnand %p1794_p7, %p1790_p2 }
 0x69e   : > { %v1064_v8 = vpop.xlane.xlu1 %1063 }
 0x69f   : > { %v1072_v9 = vmul.f32 %v1071_v7, %v1064_v8 }
 0x6a1   : > { %v1073_v10 = vsub.f32 %v1058_v62, %v1072_v9 }
 0x6a3   : > { %v1074_v11 = vmul.f32 %v1073_v10, %v1073_v10 }
 0x6a5   : > { %v1075_v12 = vsel %vm1061_vm6, %v1074_v11, 0.0 }
 0x6a6   : > { %1076 = vadd.xlane.f32.xlu0 %v1075_v12 }
 0x719   : > { %v1077_v16 = vpop.xlane.xlu0 %1076 }
 0x71a   : > { %v1078_v17 = vmul.f32 %v1077_v16, %v1071_v7 }
 0x71c   : > { %v1079_v19 = vadd.f32 1e-05, %v1078_v17 }
 0x71e   : > { %1647 = vrsqrt.f32 %v1079_v19  ;;  %vm1086_vm9 = vweird.f32 %v1079_v19 }
 0x724   : > { %v1648_v20 = vpop.eup %1647 }
 0x725   : > { %v1081_v21 = vmul.f32 %v1648_v20, %v1079_v19  ;;  %vm1087_vm8 = vweird.f32 %v1648_v20 }
 0x726   : > { %vm1088_vm10 = vmor %vm1086_vm9, %vm1087_vm8 }
 0x727   : > { %v1082_v22 = vmul.f32 %v1648_v20, %v1081_v21 }
 0x729   : > { %v1083_v23 = vmul.f32 0.5, %v1082_v22 }
 0x72b   : > { %v1084_v24 = vsub.f32 1.5, %v1083_v23 }
 0x72d   : > { %v1085_v25 = vmul.f32 %v1648_v20, %v1084_v24 }
 0x72f   : > { %v1089_v27 = vsel %vm1088_vm10, %v1648_v20, %v1085_v25 }
 0x730   : > { %v1090_v29 = vmul.f32 %v1089_v27, %v1073_v10 }
 0x732   : > { %v1094_v30 = vmul.f32 %v1623_v26, %v1090_v29 }
 0x734   : > { %v1098_v31 = vadd.f32 %v1624_v28, %v1094_v30 }
 0x736   : > { %v1099_v32 = vpack.c.bf16 %v1098_v31, %v1098_v31 }
 0x738   : > { %1438 = vmatmul.msk.bf16.vlgmr.msrb.gmra.mxu1 %vm1061_vm6, %v1099_v32 }
 0x7b5   : > { %v1132_v36 = vpop.f32.mrf.mxu1 }
 0x7b6   : > { %v1133_v37 = vadd.f32 %v1625_v35, %v1132_v36 }
 0x7b8   : > { %v1136_v38 = vmax.f32 %v1133_v37, 0.0 }
 0x7ba   : > { %v1137_v39 = vpack.c.bf16 %v1136_v38, %v1136_v38 }
 0x7bc   : > { %1455 = vmatmul.msk.bf16.vlgmr.msrb.gmra.mxu3 %vm1174_vm11, %v1137_v39 }
 0x7bd   : > { %v1134_v41 = vpop.f32.mrf.mxu1 }
 0x83f   : > { %v1187_v43 = vpop.f32.mrf.mxu3 }
 0x840   : > { %v1188_v44 = vadd.f32 %v1626_v42, %v1187_v43 }
 0x842   : > { %v1191_v45 = vadd.f32 %v1188_v44, %v1098_v31 }
 0x844   : > { %v1194_v46 = vsel %vm1061_vm6, %v1191_v45, 0.0 }
 0x845   : > { %1195 = vadd.xlane.f32.xlu2 %v1194_v46 }
 0x847   : > { %v1189_v47 = vpop.f32.mrf.mxu3 }
 0x8b8   : > { %v1196_v48 = vpop.xlane.xlu2 %1195 }
 0x8b9   : > { %v1197_v40 = vmul.f32 %v1196_v48, %v1071_v7 }
 0x8bb   : > { %v1198_v49 = vsub.f32 %v1191_v45, %v1197_v40 }
 0x8bd   : > { %v1199_v50 = vmul.f32 %v1198_v49, %v1198_v49 }
 0x8bf   : > { %v1200_v51 = vsel %vm1061_vm6, %v1199_v50, 0.0 }
 0x8c0   : > { %1201 = vadd.xlane.f32.xlu2 %v1200_v51 }
 0x933   : > { %v1202_v52 = vpop.xlane.xlu2 %1201 }
 0x934   : > { %v1203_v53 = vmul.f32 %v1202_v52, %v1071_v7 }
 0x936   : > { %v1204_v54 = vadd.f32 1e-05, %v1203_v53 }
 0x938   : > { %1649 = vrsqrt.f32 %v1204_v54  ;;  %vm1211_vm13 = vweird.f32 %v1204_v54 }
 0x93e   : > { %v1650_v55 = vpop.eup %1649 }
 0x93f   : > { %v1206_v56 = vmul.f32 %v1650_v55, %v1204_v54  ;;  %vm1212_vm12 = vweird.f32 %v1650_v55 }
 0x940   : > { %vm1213_vm14 = vmor %vm1211_vm13, %vm1212_vm12 }
 0x941   : > { %v1207_v57 = vmul.f32 %v1650_v55, %v1206_v56 }
 0x943   : > { %v1208_v58 = vmul.f32 0.5, %v1207_v57 }
 0x945   : > { %v1209_v59 = vsub.f32 1.5, %v1208_v58 }
 0x947   : > { %v1210_v60 = vmul.f32 %v1650_v55, %v1209_v59 }
 0x949   : > { %v1214_v62 = vsel %vm1213_vm14, %v1650_v55, %v1210_v60 }
 0x94a   : > { %v1215_v63 = vmul.f32 %v1214_v62, %v1198_v49 }
 0x94c   : > { %v1219_v1 = vmul.f32 %v1627_v61, %v1215_v63 }
 0x94e   : > { %v1223_v2 = vadd.f32 %v1628_v0, %v1219_v1 }
 0x950   : > { %1224 = vst.msk [vmem:[%s620_s8] sm:$0xff] %vm1061_vm6, %v1223_v2 }
 0x951   : > { %1798 = shalt.err (!%p1795_p8)
}
 0x952   : > { %1489 = dma.vmem_to_hbm [thread:$0]  (%p2073_p6), %s1241_s20, 128, %s1243_s9, %s1226_s19  }
 0x953 PF: > { %s2401_s3 = sld [smem:[#allocation17_spill]]  ;;  %p1516_p9 = scmp.ge.s32.totalorder %s1901_s0, 2 }
 0x955   : > { %p1506_p12 = pnand %p1516_p9, %p2079_p10 }
 0x957   : > { %p1507_p13 = pneg %p1506_p12 }
 0x959   : > { %s1254_s8 = sand.u32 1, %s2401_s3  }
 0x95a   : > { %s1255_s21 = scalar_lea.sflag [#allocation6], %s1254_s8 }
 0x95b   : > { %1856 = dma.done.wait (%p1507_p13), %s1255_s21, 128  }
 0x95c   : > { %1858 = vsyncadd (%p1507_p13), %s1255_s21, 4294967168  ;;  %s34_s0 = sadd.s32 1, %s1901_s0   ;;  %s2403_s27 = sld [smem:[#allocation18_spill]] }
 0x95d   : > { %p31_p11 = scmp.ge.s32.totalorder %s34_s0, 6   ;;  %s2404_s29 = sld [smem:[#allocation21_spill]] }
 0x95e   : > { %s2405_s6 = sld [smem:[#allocation22_spill]]  ;;  %s2406_s21 = smov %s1865_s22 }
 0x95f   : > { %s2407_s22 = smov %s1869_s23  ;;  %s2408_s23 = smov %s2137_s24 }
 0x960   : > { %s2409_s24 = smov %s1877_s25  ;;  %s2410_s25 = smov %s1881_s26 }
 0x961   : > { %s2411_s26 = smov %s2134_s11  ;;  %s2412_s28 = smov %s1897_s30 }
 0x962   :  { %33 = sbr.rel (!%p31_p11) target bundleno = 27 (0x1b), region = 153 }
 0x964   : > { %s2413_s30 = smov %s2405_s6 }
 0x967   :  { %1261 = vsyncpa [#allocation5], 1 }
 0x968   :  { %1263 = vsyncpa [#allocation5 + $0x1], 1 }
 0x969   :  { %1264 = vsyncpa [#allocation8], 1 }
 0x96a   :  { %1265 = vsyncpa [#allocation11], 1 }
 0x96b   :  { %1266 = vsyncpa [#allocation6], 1 }
 0x96c   :  { %1268 = vsyncpa [#allocation6 + $0x1], 1 }

</bundles_post_ra>
